<compile_context>
chip_gen: v7x
topology: tpu7x:2x2x1
jax: 0.10.0
libtpu: 0.0.40
codegen_flags: <defaults>
</compile_context>

<pallas_src>
import functools

import jax
import jax.numpy as jnp
from jax.experimental import pallas as pl
from jax.experimental.pallas import tpu as pltpu

BN_EPS = 1e-5
LRELU_SLOPE = 0.2


def _round_up(x, m):
    return (x + m - 1) // m * m


def _hw_config():
    """Per-generation tile caps and scoped-VMEM limit."""
    vmem = 64 * 1024 * 1024
    try:
        vmem = int(pltpu.get_tpu_info().vmem_capacity_bytes)
    except Exception:
        pass
    if vmem >= 128 * 1024 * 1024:          # v5e / v6e (128 MiB VMEM)
        return {"a_cap": 8 * 1024 * 1024, "tm_max": 1024, "tc_max": 512,
                "vmem_limit": 96 * 1024 * 1024}
    # v7x (64 MiB per TensorCore) or unknown: conservative caps.
    return {"a_cap": 4 * 1024 * 1024, "tm_max": 512, "tc_max": 256,
            "vmem_limit": 40 * 1024 * 1024}


_HW = _hw_config()


# ----------------------------- Pallas kernels ------------------------------

def matmul_lrelu_kernel(a_ref, b_ref, o_ref):
    """o = LeakyReLU_0.2(A @ B) for one (TM, TC) output tile (no BatchNorm)."""
    y = jnp.dot(a_ref[...], b_ref[...], preferred_element_type=jnp.float32)
    o_ref[...] = jnp.maximum(y, LRELU_SLOPE * y).astype(o_ref.dtype)


def matmul_stats_kernel(a_ref, b_ref, y_ref, sum_ref, sumsq_ref):
    """Pass A of a BN layer: y tile = A @ B plus per-tile partial channel stats.

    Each (m, c) grid step writes its own (TM, TC) bf16 y block and its own
    (8, TC) f32 partial sum / sum-of-squares block (sublane-shaped so no
    cross-sublane XLU reduce is needed in-kernel; the collapse to (1, C)
    happens in JAX glue).  No cross-iteration accumulation, so every grid
    axis is "parallel" (megacore-friendly).  Zero-padded rows of A contribute
    exactly zero to y and to the stats.
    """
    y = jnp.dot(a_ref[...], b_ref[...], preferred_element_type=jnp.float32)
    y_ref[...] = y.astype(y_ref.dtype)
    tm, tc = y.shape
    y3 = y.reshape(tm // 8, 8, tc)
    sum_ref[...] = jnp.sum(y3, axis=0)
    sumsq_ref[...] = jnp.sum(y3 * y3, axis=0)


def bn_lrelu_kernel(y_ref, scale_ref, shift_ref, o_ref):
    """Pass B: o = LeakyReLU_0.2(y * scale + shift), per-channel scale/shift.

    y is bf16 in HBM; the FMA is done in f32; output is bf16.
    """
    t = y_ref[...].astype(jnp.float32) * scale_ref[...] + shift_ref[...]
    o_ref[...] = jnp.maximum(t, LRELU_SLOPE * t).astype(o_ref.dtype)


# --------------------------- Pallas layer wrapper ---------------------------

def _tile_sizes(M, Kp, Cp):
    """Pick (Mp, TM, TC) given already-aligned Kp, Cp and generation caps."""
    tc_max = _HW["tc_max"]
    if Cp % tc_max == 0:
        TC = tc_max
    elif tc_max >= 256 and Cp % 256 == 0:
        TC = 256
    else:
        TC = 128
    # Cap the bf16 (TM, Kp) A block so double-buffered inputs fit under the
    # scoped VMEM limit on the current generation.
    cap = max(128, _HW["a_cap"] // (2 * Kp))
    cap = max(8, (cap // 8) * 8)
    TM = min(_HW["tm_max"], cap)
    M8 = _round_up(max(M, 1), 8)
    if M8 <= TM:
        TM = M8
    Mp = _round_up(M8, TM)
    return Mp, TM, TC


def pallas_conv_layer(patches, w2p, gamma_p, beta_p, cout):
    """One conv layer: LeakyReLU(BN?(patches @ W)) via tiled Pallas matmuls.

    patches: (M, K) bf16 im2col activations.
    w2p:     (Kp, Cp) bf16 pre-padded weight matrix.
    gamma_p/beta_p: (1, Cp) f32 (pre-padded) or None for the first layer.
    cout:    true number of output channels (static Python int).
    Returns (M, cout) bf16.
    """
    M, K = patches.shape
    Kp, Cp = w2p.shape
    Mp, TM, TC = _tile_sizes(M, Kp, Cp)
    m_tiles, c_tiles = Mp // TM, Cp // TC

    # Zero-pad activations to aligned tiles (bf16; weights already padded).
    a = jnp.pad(patches, ((0, Mp - M), (0, Kp - K)))

    if gamma_p is None:
        y = pl.pallas_call(
            matmul_lrelu_kernel,
            out_shape=jax.ShapeDtypeStruct((Mp, Cp), jnp.bfloat16),
            grid=(m_tiles, c_tiles),        # c innermost: A tile stays resident
            in_specs=[
                pl.BlockSpec((TM, Kp), lambda m, c: (m, 0)),
                pl.BlockSpec((Kp, TC), lambda m, c: (0, c)),
            ],
            out_specs=pl.BlockSpec((TM, TC), lambda m, c: (m, c)),
            compiler_params=pltpu.CompilerParams(
                dimension_semantics=("parallel", "parallel"),
                vmem_limit_bytes=_HW["vmem_limit"]),
        )(a, w2p)
        return y[:M, :cout]

    # ---- Pass A: tiled matmul + per-tile partial sum / sum-of-squares ------
    y, s_part, ss_part = pl.pallas_call(
        matmul_stats_kernel,
        out_shape=(
            jax.ShapeDtypeStruct((Mp, Cp), jnp.bfloat16),
            jax.ShapeDtypeStruct((m_tiles * 8, Cp), jnp.float32),
            jax.ShapeDtypeStruct((m_tiles * 8, Cp), jnp.float32),
        ),
        grid=(m_tiles, c_tiles),            # c innermost: A tile stays resident
        in_specs=[
            pl.BlockSpec((TM, Kp), lambda m, c: (m, 0)),
            pl.BlockSpec((Kp, TC), lambda m, c: (0, c)),
        ],
        out_specs=(
            pl.BlockSpec((TM, TC), lambda m, c: (m, c)),
            pl.BlockSpec((8, TC), lambda m, c: (m, c)),
            pl.BlockSpec((8, TC), lambda m, c: (m, c)),
        ),
        compiler_params=pltpu.CompilerParams(
            dimension_semantics=("parallel", "parallel"),
            vmem_limit_bytes=_HW["vmem_limit"]),
    )(a, w2p)

    # ---- Tiny glue: collapse partials, fold batch stats into a single FMA --
    inv_m = 1.0 / float(M)
    s = jnp.sum(s_part, axis=0, keepdims=True)       # (1, Cp)
    ss = jnp.sum(ss_part, axis=0, keepdims=True)     # (1, Cp)
    mean = s * inv_m                                  # padded rows summed to 0
    var = jnp.maximum(ss * inv_m - mean * mean, 0.0)  # biased var (training BN)
    scale = gamma_p * jax.lax.rsqrt(var + BN_EPS)
    shift = beta_p - mean * scale

    # ---- Pass B: tiled FMA + LeakyReLU epilogue (bf16 in / bf16 out) -------
    out = pl.pallas_call(
        bn_lrelu_kernel,
        out_shape=jax.ShapeDtypeStruct((Mp, Cp), jnp.bfloat16),
        grid=(m_tiles, c_tiles),
        in_specs=[
            pl.BlockSpec((TM, TC), lambda m, c: (m, c)),
            pl.BlockSpec((1, TC), lambda m, c: (0, c)),
            pl.BlockSpec((1, TC), lambda m, c: (0, c)),
        ],
        out_specs=pl.BlockSpec((TM, TC), lambda m, c: (m, c)),
        compiler_params=pltpu.CompilerParams(
            dimension_semantics=("parallel", "parallel"),
            vmem_limit_bytes=_HW["vmem_limit"]),
    )(y, scale, shift)
    return out[:M, :cout]


# --------------------------------- Glue -------------------------------------

def im2col(x_nhwc, kh, kw, stride, pad):
    """Extract conv patches. Returns (N*OH*OW, kh*kw*C), OH, OW.

    Column ordering is (kh, kw, cin) to match the weight flattening below.
    Input (and therefore the materialized patch expansion) stays bf16.
    """
    N, H, W, C = x_nhwc.shape
    xp = jnp.pad(x_nhwc, ((0, 0), (pad, pad), (pad, pad), (0, 0)))
    OH = (H + 2 * pad - kh) // stride + 1
    OW = (W + 2 * pad - kw) // stride + 1
    cols = []
    for i in range(kh):
        for j in range(kw):
            cols.append(xp[:, i:i + stride * OH:stride,
                           j:j + stride * OW:stride, :])
    cols = jnp.stack(cols, axis=3)                 # (N, OH, OW, kh*kw, C)
    return cols.reshape(N * OH * OW, kh * kw * C), OH, OW


def flatten_conv_weight(w_oihw):
    """PyTorch OIHW (Cout, Cin, KH, KW) -> (KH*KW*Cin, Cout) for the matmul."""
    cout = w_oihw.shape[0]
    return jnp.transpose(w_oihw, (0, 2, 3, 1)).reshape(cout, -1).T


def init_params(key, n_c):
    """Deterministic synthetic weights (PyTorch-style uniform fan-in scale)."""
    chans = [(3, n_c), (n_c, 2 * n_c), (2 * n_c, 4 * n_c), (4 * n_c, 8 * n_c)]
    params = []
    for li, (cin, cout) in enumerate(chans):
        key, wk = jax.random.split(key)
        fan_in = cin * 4 * 4
        bound = 1.0 / jnp.sqrt(float(fan_in))
        w = jax.random.uniform(wk, (cout, cin, 4, 4), jnp.float32,
                               minval=-bound, maxval=bound)
        layer = {"w": w}
        if li > 0:  # layers 2-4 have BatchNorm (gamma=1, beta=0 at init)
            layer["gamma"] = jnp.ones((1, cout), jnp.float32)
            layer["beta"] = jnp.zeros((1, cout), jnp.float32)
        params.append(layer)
    return params


def prepare_params(params):
    """Pre-flatten / pre-pad / pre-cast weights once (outside the jit)."""
    prep = []
    for layer in params:
        w = layer["w"]
        cout, cin = int(w.shape[0]), int(w.shape[1])
        K = cin * 16
        Kp, Cp = _round_up(K, 128), _round_up(cout, 128)
        w2 = flatten_conv_weight(w)                         # (K, Cout) f32
        w2p = jnp.pad(w2.astype(jnp.bfloat16), ((0, Kp - K), (0, Cp - cout)))
        entry = {"w2p": w2p}
        if "gamma" in layer:
            entry["gamma_p"] = jnp.pad(layer["gamma"], ((0, 0), (0, Cp - cout)))
            entry["beta_p"] = jnp.pad(layer["beta"], ((0, 0), (0, Cp - cout)))
        prep.append(entry)
    return prep


@functools.partial(jax.jit, static_argnums=(2,))
def image_encoder_forward(x_nchw, prep_params, n_c):
    chans = [n_c, 2 * n_c, 4 * n_c, 8 * n_c]
    x = jnp.transpose(x_nchw, (0, 2, 3, 1)).astype(jnp.bfloat16)  # -> NHWC bf16
    for layer, cout in zip(prep_params, chans):
        N = x.shape[0]
        patches, OH, OW = im2col(x, 4, 4, 2, 1)
        y = pallas_conv_layer(patches, layer["w2p"],
                              layer.get("gamma_p"), layer.get("beta_p"), cout)
        x = y.reshape(N, OH, OW, cout)
    return jnp.transpose(x, (0, 3, 1, 2))  # back to NCHW (bf16)


# Reference: same module semantics via lax.conv, precision-matched to the
# Pallas path (bf16 matmul operands, f32 accumulation, BN stats from the f32
# result, bf16 storage of y before the BN FMA and of each layer's output).
def reference_forward(x_nchw, params):
    x = x_nchw.astype(jnp.bfloat16)
    for layer in params:
        y = jax.lax.conv_general_dilated(
            x, layer["w"].astype(jnp.bfloat16),
            window_strides=(2, 2), padding=((1, 1), (1, 1)),
            dimension_numbers=("NCHW", "OIHW", "NCHW"),
            preferred_element_type=jnp.float32)
        if "gamma" in layer:
            m = jnp.mean(y, axis=(0, 2, 3), keepdims=True)
            var = jnp.maximum(
                jnp.mean(y * y, axis=(0, 2, 3), keepdims=True) - m * m, 0.0)
            g = layer["gamma"].reshape(1, -1, 1, 1)
            b = layer["beta"].reshape(1, -1, 1, 1)
            scale = g * jax.lax.rsqrt(var + BN_EPS)
            shift = b - m * scale
            yq = y.astype(jnp.bfloat16).astype(jnp.float32)  # matches Pass A store
            t = yq * scale + shift
        else:
            t = y
        act = jnp.maximum(t, LRELU_SLOPE * t)
        x = act.astype(jnp.bfloat16)                         # matches bf16 output
    return x.astype(jnp.float32)


if __name__ == "__main__":
    key = jax.random.PRNGKey(0)
    k_x, k_p = jax.random.split(key)

    n_c = 4
    x = jax.random.normal(k_x, (4, 3, 16, 16), jnp.float32)  # NCHW, like PyTorch
    params = init_params(k_p, n_c)
    prep = prepare_params(params)

    out = jax.block_until_ready(image_encoder_forward(x, prep, n_c))
    assert out.shape == (4, 8 * n_c, 1, 1), out.shape

    ref = jax.block_until_ready(reference_forward(x, params))
    out_f32 = out.astype(jnp.float32)
    # bf16 end-to-end activations: allow ~a couple of bf16 ulps of drift from
    # summation-order differences between the MXU path and lax.conv.
    assert jnp.allclose(out_f32, ref, rtol=3e-2, atol=3e-2), (
        float(jnp.max(jnp.abs(out_f32 - ref))))

    print("KERNEL_OK")
</pallas_src>

<mosaic_0001>
module attributes {stable_mosaic.version = 11 : i64} {
  func.func @matmul_lrelu_kernel(%arg0: i32, %arg1: i32, %arg2: memref<256x128xbf16, #tpu.memory_space<vmem>>, %arg3: memref<128x128xbf16, #tpu.memory_space<vmem>>, %arg4: memref<256x128xbf16, #tpu.memory_space<vmem>>) attributes {dimension_semantics = [#tpu.dimension_semantics<parallel>, #tpu.dimension_semantics<parallel>], iteration_bounds = array<i64: 1, 1>, scalar_prefetch = 0 : i64, scratch_operands = 0 : i64, tpu.core_type = #tpu.core_type<tc>, window_params = [{transform_indices = @transform_0, window_bounds = array<i64: 256, 128>}, {transform_indices = @transform_1, window_bounds = array<i64: 128, 128>}, {transform_indices = @transform_2, window_bounds = array<i64: 256, 128>}]} {
    %c0 = arith.constant 0 : index
    %c0_0 = arith.constant 0 : index
    %0 = vector.load %arg2[%c0, %c0_0] : memref<256x128xbf16, #tpu.memory_space<vmem>>, vector<256x128xbf16>
    %c0_1 = arith.constant 0 : index
    %c0_2 = arith.constant 0 : index
    %1 = vector.load %arg3[%c0_1, %c0_2] : memref<128x128xbf16, #tpu.memory_space<vmem>>, vector<128x128xbf16>
    %cst = arith.constant dense<0.000000e+00> : vector<256x128xf32>
    %2 = tpu.matmul %0, %1, %cst {dimension_numbers = #tpu.dot_dimension_numbers<[1], [0], [0], [1], [0, 0, 1, 1], [], []>} : vector<256x128xbf16>, vector<128x128xbf16>, vector<256x128xf32> -> vector<256x128xf32>
    %cst_3 = arith.constant 2.000000e-01 : f32
    %3 = vector.broadcast %cst_3 : f32 to vector<256x128xf32>
    %4 = arith.mulf %3, %2 : vector<256x128xf32>
    %5 = arith.maximumf %2, %4 : vector<256x128xf32>
    %6 = arith.truncf %5 : vector<256x128xf32> to vector<256x128xbf16>
    %c0_4 = arith.constant 0 : index
    %c0_5 = arith.constant 0 : index
    %7 = vector.load %arg4[%c0_4, %c0_5] : memref<256x128xbf16, #tpu.memory_space<vmem>>, vector<256x128xbf16>
    tpu.vector_store %arg4[%c0_4, %c0_5], %6 {strides = array<i32>} : memref<256x128xbf16, #tpu.memory_space<vmem>>, vector<256x128xbf16>,
    return
  }
  func.func @transform_0(%arg0: i32, %arg1: i32) -> (i32, i32) {
    %c0_i32 = arith.constant 0 : i32
    %c0_i32_0 = arith.constant 0 : i32
    return %arg0, %c0_i32 : i32, i32
  }
  func.func @transform_1(%arg0: i32, %arg1: i32) -> (i32, i32) {
    %c0_i32 = arith.constant 0 : i32
    %c0_i32_0 = arith.constant 0 : i32
    return %c0_i32, %arg1 : i32, i32
  }
  func.func @transform_2(%arg0: i32, %arg1: i32) -> (i32, i32) {
    %c0_i32 = arith.constant 0 : i32
    return %arg0, %arg1 : i32, i32
  }
}

module attributes {stable_mosaic.version = 11 : i64} {
  func.func @matmul_stats_kernel(%arg0: i32, %arg1: i32, %arg2: memref<64x128xbf16, #tpu.memory_space<vmem>>, %arg3: memref<128x128xbf16, #tpu.memory_space<vmem>>, %arg4: memref<64x128xbf16, #tpu.memory_space<vmem>>, %arg5: memref<8x128xf32, #tpu.memory_space<vmem>>, %arg6: memref<8x128xf32, #tpu.memory_space<vmem>>) attributes {dimension_semantics = [#tpu.dimension_semantics<parallel>, #tpu.dimension_semantics<parallel>], iteration_bounds = array<i64: 1, 1>, scalar_prefetch = 0 : i64, scratch_operands = 0 : i64, tpu.core_type = #tpu.core_type<tc>, window_params = [{transform_indices = @transform_0, window_bounds = array<i64: 64, 128>}, {transform_indices = @transform_1, window_bounds = array<i64: 128, 128>}, {transform_indices = @transform_2, window_bounds = array<i64: 64, 128>}, {transform_indices = @transform_3, window_bounds = array<i64: 8, 128>}, {transform_indices = @transform_4, window_bounds = array<i64: 8, 128>}]} {
    %c0 = arith.constant 0 : index
    %c0_0 = arith.constant 0 : index
    %0 = vector.load %arg2[%c0, %c0_0] : memref<64x128xbf16, #tpu.memory_space<vmem>>, vector<64x128xbf16>
    %c0_1 = arith.constant 0 : index
    %c0_2 = arith.constant 0 : index
    %1 = vector.load %arg3[%c0_1, %c0_2] : memref<128x128xbf16, #tpu.memory_space<vmem>>, vector<128x128xbf16>
    %cst = arith.constant dense<0.000000e+00> : vector<64x128xf32>
    %2 = tpu.matmul %0, %1, %cst {dimension_numbers = #tpu.dot_dimension_numbers<[1], [0], [0], [1], [0, 0, 1, 1], [], []>} : vector<64x128xbf16>, vector<128x128xbf16>, vector<64x128xf32> -> vector<64x128xf32>
    %3 = arith.truncf %2 : vector<64x128xf32> to vector<64x128xbf16>
    %c0_3 = arith.constant 0 : index
    %c0_4 = arith.constant 0 : index
    %4 = vector.load %arg4[%c0_3, %c0_4] : memref<64x128xbf16, #tpu.memory_space<vmem>>, vector<64x128xbf16>
    tpu.vector_store %arg4[%c0_3, %c0_4], %3 {strides = array<i32>} : memref<64x128xbf16, #tpu.memory_space<vmem>>, vector<64x128xbf16>,
    %5 = vector.shape_cast %2 : vector<64x128xf32> to vector<8x8x128xf32>
    %cst_5 = arith.constant dense<0.000000e+00> : vector<8x128xf32>
    %6 = vector.multi_reduction <add>, %5, %cst_5 [0] : vector<8x8x128xf32> to vector<8x128xf32>
    %c0_6 = arith.constant 0 : index
    %c0_7 = arith.constant 0 : index
    %7 = vector.load %arg5[%c0_6, %c0_7] : memref<8x128xf32, #tpu.memory_space<vmem>>, vector<8x128xf32>
    tpu.vector_store %arg5[%c0_6, %c0_7], %6 {strides = array<i32>} : memref<8x128xf32, #tpu.memory_space<vmem>>, vector<8x128xf32>,
    %8 = arith.mulf %5, %5 : vector<8x8x128xf32>
    %cst_8 = arith.constant dense<0.000000e+00> : vector<8x128xf32>
    %9 = vector.multi_reduction <add>, %8, %cst_8 [0] : vector<8x8x128xf32> to vector<8x128xf32>
    %c0_9 = arith.constant 0 : index
    %c0_10 = arith.constant 0 : index
    %10 = vector.load %arg6[%c0_9, %c0_10] : memref<8x128xf32, #tpu.memory_space<vmem>>, vector<8x128xf32>
    tpu.vector_store %arg6[%c0_9, %c0_10], %9 {strides = array<i32>} : memref<8x128xf32, #tpu.memory_space<vmem>>, vector<8x128xf32>,
    return
  }
  func.func @transform_0(%arg0: i32, %arg1: i32) -> (i32, i32) {
    %c0_i32 = arith.constant 0 : i32
    %c0_i32_0 = arith.constant 0 : i32
    return %arg0, %c0_i32 : i32, i32
  }
  func.func @transform_1(%arg0: i32, %arg1: i32) -> (i32, i32) {
    %c0_i32 = arith.constant 0 : i32
    %c0_i32_0 = arith.constant 0 : i32
    return %c0_i32, %arg1 : i32, i32
  }
  func.func @transform_2(%arg0: i32, %arg1: i32) -> (i32, i32) {
    %c0_i32 = arith.constant 0 : i32
    return %arg0, %arg1 : i32, i32
  }
  func.func @transform_3(%arg0: i32, %arg1: i32) -> (i32, i32) {
    %c0_i32 = arith.constant 0 : i32
    return %arg0, %arg1 : i32, i32
  }
  func.func @transform_4(%arg0: i32, %arg1: i32) -> (i32, i32) {
    %c0_i32 = arith.constant 0 : i32
    return %arg0, %arg1 : i32, i32
  }
}

module attributes {stable_mosaic.version = 11 : i64} {
  func.func @bn_lrelu_kernel(%arg0: i32, %arg1: i32, %arg2: memref<64x128xbf16, #tpu.memory_space<vmem>>, %arg3: memref<1x128xf32, #tpu.memory_space<vmem>>, %arg4: memref<1x128xf32, #tpu.memory_space<vmem>>, %arg5: memref<64x128xbf16, #tpu.memory_space<vmem>>) attributes {dimension_semantics = [#tpu.dimension_semantics<parallel>, #tpu.dimension_semantics<parallel>], iteration_bounds = array<i64: 1, 1>, scalar_prefetch = 0 : i64, scratch_operands = 0 : i64, tpu.core_type = #tpu.core_type<tc>, window_params = [{transform_indices = @transform_0, window_bounds = array<i64: 64, 128>}, {transform_indices = @transform_1, window_bounds = array<i64: 1, 128>}, {transform_indices = @transform_2, window_bounds = array<i64: 1, 128>}, {transform_indices = @transform_3, window_bounds = array<i64: 64, 128>}]} {
    %c0 = arith.constant 0 : index
    %c0_0 = arith.constant 0 : index
    %0 = vector.load %arg2[%c0, %c0_0] : memref<64x128xbf16, #tpu.memory_space<vmem>>, vector<64x128xbf16>
    %1 = arith.extf %0 : vector<64x128xbf16> to vector<64x128xf32>
    %c0_1 = arith.constant 0 : index
    %c0_2 = arith.constant 0 : index
    %2 = vector.load %arg3[%c0_1, %c0_2] : memref<1x128xf32, #tpu.memory_space<vmem>>, vector<1x128xf32>
    %3 = vector.broadcast %2 : vector<1x128xf32> to vector<64x128xf32>
    %4 = arith.mulf %1, %3 : vector<64x128xf32>
    %c0_3 = arith.constant 0 : index
    %c0_4 = arith.constant 0 : index
    %5 = vector.load %arg4[%c0_3, %c0_4] : memref<1x128xf32, #tpu.memory_space<vmem>>, vector<1x128xf32>
    %6 = vector.broadcast %5 : vector<1x128xf32> to vector<64x128xf32>
    %7 = arith.addf %4, %6 : vector<64x128xf32>
    %cst = arith.constant 2.000000e-01 : f32
    %8 = vector.broadcast %cst : f32 to vector<64x128xf32>
    %9 = arith.mulf %8, %7 : vector<64x128xf32>
    %10 = arith.maximumf %7, %9 : vector<64x128xf32>
    %11 = arith.truncf %10 : vector<64x128xf32> to vector<64x128xbf16>
    %c0_5 = arith.constant 0 : index
    %c0_6 = arith.constant 0 : index
    %12 = vector.load %arg5[%c0_5, %c0_6] : memref<64x128xbf16, #tpu.memory_space<vmem>>, vector<64x128xbf16>
    tpu.vector_store %arg5[%c0_5, %c0_6], %11 {strides = array<i32>} : memref<64x128xbf16, #tpu.memory_space<vmem>>, vector<64x128xbf16>,
    return
  }
  func.func @transform_0(%arg0: i32, %arg1: i32) -> (i32, i32) {
    %c0_i32 = arith.constant 0 : i32
    return %arg0, %arg1 : i32, i32
  }
  func.func @transform_1(%arg0: i32, %arg1: i32) -> (i32, i32) {
    %c0_i32 = arith.constant 0 : i32
    %c0_i32_0 = arith.constant 0 : i32
    return %c0_i32, %arg1 : i32, i32
  }
  func.func @transform_2(%arg0: i32, %arg1: i32) -> (i32, i32) {
    %c0_i32 = arith.constant 0 : i32
    %c0_i32_0 = arith.constant 0 : i32
    return %c0_i32, %arg1 : i32, i32
  }
  func.func @transform_3(%arg0: i32, %arg1: i32) -> (i32, i32) {
    %c0_i32 = arith.constant 0 : i32
    return %arg0, %arg1 : i32, i32
  }
}

module attributes {stable_mosaic.version = 11 : i64} {
  func.func @matmul_stats_kernel(%arg0: i32, %arg1: i32, %arg2: memref<16x128xbf16, #tpu.memory_space<vmem>>, %arg3: memref<128x128xbf16, #tpu.memory_space<vmem>>, %arg4: memref<16x128xbf16, #tpu.memory_space<vmem>>, %arg5: memref<8x128xf32, #tpu.memory_space<vmem>>, %arg6: memref<8x128xf32, #tpu.memory_space<vmem>>) attributes {dimension_semantics = [#tpu.dimension_semantics<parallel>, #tpu.dimension_semantics<parallel>], iteration_bounds = array<i64: 1, 1>, scalar_prefetch = 0 : i64, scratch_operands = 0 : i64, tpu.core_type = #tpu.core_type<tc>, window_params = [{transform_indices = @transform_0, window_bounds = array<i64: 16, 128>}, {transform_indices = @transform_1, window_bounds = array<i64: 128, 128>}, {transform_indices = @transform_2, window_bounds = array<i64: 16, 128>}, {transform_indices = @transform_3, window_bounds = array<i64: 8, 128>}, {transform_indices = @transform_4, window_bounds = array<i64: 8, 128>}]} {
    %c0 = arith.constant 0 : index
    %c0_0 = arith.constant 0 : index
    %0 = vector.load %arg2[%c0, %c0_0] : memref<16x128xbf16, #tpu.memory_space<vmem>>, vector<16x128xbf16>
    %c0_1 = arith.constant 0 : index
    %c0_2 = arith.constant 0 : index
    %1 = vector.load %arg3[%c0_1, %c0_2] : memref<128x128xbf16, #tpu.memory_space<vmem>>, vector<128x128xbf16>
    %cst = arith.constant dense<0.000000e+00> : vector<16x128xf32>
    %2 = tpu.matmul %0, %1, %cst {dimension_numbers = #tpu.dot_dimension_numbers<[1], [0], [0], [1], [0, 0, 1, 1], [], []>} : vector<16x128xbf16>, vector<128x128xbf16>, vector<16x128xf32> -> vector<16x128xf32>
    %3 = arith.truncf %2 : vector<16x128xf32> to vector<16x128xbf16>
    %c0_3 = arith.constant 0 : index
    %c0_4 = arith.constant 0 : index
    %4 = vector.load %arg4[%c0_3, %c0_4] : memref<16x128xbf16, #tpu.memory_space<vmem>>, vector<16x128xbf16>
    tpu.vector_store %arg4[%c0_3, %c0_4], %3 {strides = array<i32>} : memref<16x128xbf16, #tpu.memory_space<vmem>>, vector<16x128xbf16>,
    %5 = vector.shape_cast %2 : vector<16x128xf32> to vector<2x8x128xf32>
    %cst_5 = arith.constant dense<0.000000e+00> : vector<8x128xf32>
    %6 = vector.multi_reduction <add>, %5, %cst_5 [0] : vector<2x8x128xf32> to vector<8x128xf32>
    %c0_6 = arith.constant 0 : index
    %c0_7 = arith.constant 0 : index
    %7 = vector.load %arg5[%c0_6, %c0_7] : memref<8x128xf32, #tpu.memory_space<vmem>>, vector<8x128xf32>
    tpu.vector_store %arg5[%c0_6, %c0_7], %6 {strides = array<i32>} : memref<8x128xf32, #tpu.memory_space<vmem>>, vector<8x128xf32>,
    %8 = arith.mulf %5, %5 : vector<2x8x128xf32>
    %cst_8 = arith.constant dense<0.000000e+00> : vector<8x128xf32>
    %9 = vector.multi_reduction <add>, %8, %cst_8 [0] : vector<2x8x128xf32> to vector<8x128xf32>
    %c0_9 = arith.constant 0 : index
    %c0_10 = arith.constant 0 : index
    %10 = vector.load %arg6[%c0_9, %c0_10] : memref<8x128xf32, #tpu.memory_space<vmem>>, vector<8x128xf32>
    tpu.vector_store %arg6[%c0_9, %c0_10], %9 {strides = array<i32>} : memref<8x128xf32, #tpu.memory_space<vmem>>, vector<8x128xf32>,
    return
  }
  func.func @transform_0(%arg0: i32, %arg1: i32) -> (i32, i32) {
    %c0_i32 = arith.constant 0 : i32
    %c0_i32_0 = arith.constant 0 : i32
    return %arg0, %c0_i32 : i32, i32
  }
  func.func @transform_1(%arg0: i32, %arg1: i32) -> (i32, i32) {
    %c0_i32 = arith.constant 0 : i32
    %c0_i32_0 = arith.constant 0 : i32
    return %c0_i32, %arg1 : i32, i32
  }
  func.func @transform_2(%arg0: i32, %arg1: i32) -> (i32, i32) {
    %c0_i32 = arith.constant 0 : i32
    return %arg0, %arg1 : i32, i32
  }
  func.func @transform_3(%arg0: i32, %arg1: i32) -> (i32, i32) {
    %c0_i32 = arith.constant 0 : i32
    return %arg0, %arg1 : i32, i32
  }
  func.func @transform_4(%arg0: i32, %arg1: i32) -> (i32, i32) {
    %c0_i32 = arith.constant 0 : i32
    return %arg0, %arg1 : i32, i32
  }
}

module attributes {stable_mosaic.version = 11 : i64} {
  func.func @bn_lrelu_kernel(%arg0: i32, %arg1: i32, %arg2: memref<16x128xbf16, #tpu.memory_space<vmem>>, %arg3: memref<1x128xf32, #tpu.memory_space<vmem>>, %arg4: memref<1x128xf32, #tpu.memory_space<vmem>>, %arg5: memref<16x128xbf16, #tpu.memory_space<vmem>>) attributes {dimension_semantics = [#tpu.dimension_semantics<parallel>, #tpu.dimension_semantics<parallel>], iteration_bounds = array<i64: 1, 1>, scalar_prefetch = 0 : i64, scratch_operands = 0 : i64, tpu.core_type = #tpu.core_type<tc>, window_params = [{transform_indices = @transform_0, window_bounds = array<i64: 16, 128>}, {transform_indices = @transform_1, window_bounds = array<i64: 1, 128>}, {transform_indices = @transform_2, window_bounds = array<i64: 1, 128>}, {transform_indices = @transform_3, window_bounds = array<i64: 16, 128>}]} {
    %c0 = arith.constant 0 : index
    %c0_0 = arith.constant 0 : index
    %0 = vector.load %arg2[%c0, %c0_0] : memref<16x128xbf16, #tpu.memory_space<vmem>>, vector<16x128xbf16>
    %1 = arith.extf %0 : vector<16x128xbf16> to vector<16x128xf32>
    %c0_1 = arith.constant 0 : index
    %c0_2 = arith.constant 0 : index
    %2 = vector.load %arg3[%c0_1, %c0_2] : memref<1x128xf32, #tpu.memory_space<vmem>>, vector<1x128xf32>
    %3 = vector.broadcast %2 : vector<1x128xf32> to vector<16x128xf32>
    %4 = arith.mulf %1, %3 : vector<16x128xf32>
    %c0_3 = arith.constant 0 : index
    %c0_4 = arith.constant 0 : index
    %5 = vector.load %arg4[%c0_3, %c0_4] : memref<1x128xf32, #tpu.memory_space<vmem>>, vector<1x128xf32>
    %6 = vector.broadcast %5 : vector<1x128xf32> to vector<16x128xf32>
    %7 = arith.addf %4, %6 : vector<16x128xf32>
    %cst = arith.constant 2.000000e-01 : f32
    %8 = vector.broadcast %cst : f32 to vector<16x128xf32>
    %9 = arith.mulf %8, %7 : vector<16x128xf32>
    %10 = arith.maximumf %7, %9 : vector<16x128xf32>
    %11 = arith.truncf %10 : vector<16x128xf32> to vector<16x128xbf16>
    %c0_5 = arith.constant 0 : index
    %c0_6 = arith.constant 0 : index
    %12 = vector.load %arg5[%c0_5, %c0_6] : memref<16x128xbf16, #tpu.memory_space<vmem>>, vector<16x128xbf16>
    tpu.vector_store %arg5[%c0_5, %c0_6], %11 {strides = array<i32>} : memref<16x128xbf16, #tpu.memory_space<vmem>>, vector<16x128xbf16>,
    return
  }
  func.func @transform_0(%arg0: i32, %arg1: i32) -> (i32, i32) {
    %c0_i32 = arith.constant 0 : i32
    return %arg0, %arg1 : i32, i32
  }
  func.func @transform_1(%arg0: i32, %arg1: i32) -> (i32, i32) {
    %c0_i32 = arith.constant 0 : i32
    %c0_i32_0 = arith.constant 0 : i32
    return %c0_i32, %arg1 : i32, i32
  }
  func.func @transform_2(%arg0: i32, %arg1: i32) -> (i32, i32) {
    %c0_i32 = arith.constant 0 : i32
    %c0_i32_0 = arith.constant 0 : i32
    return %c0_i32, %arg1 : i32, i32
  }
  func.func @transform_3(%arg0: i32, %arg1: i32) -> (i32, i32) {
    %c0_i32 = arith.constant 0 : i32
    return %arg0, %arg1 : i32, i32
  }
}

module attributes {stable_mosaic.version = 11 : i64} {
  func.func @matmul_stats_kernel(%arg0: i32, %arg1: i32, %arg2: memref<8x256xbf16, #tpu.memory_space<vmem>>, %arg3: memref<256x128xbf16, #tpu.memory_space<vmem>>, %arg4: memref<8x128xbf16, #tpu.memory_space<vmem>>, %arg5: memref<8x128xf32, #tpu.memory_space<vmem>>, %arg6: memref<8x128xf32, #tpu.memory_space<vmem>>) attributes {dimension_semantics = [#tpu.dimension_semantics<parallel>, #tpu.dimension_semantics<parallel>], iteration_bounds = array<i64: 1, 1>, scalar_prefetch = 0 : i64, scratch_operands = 0 : i64, tpu.core_type = #tpu.core_type<tc>, window_params = [{transform_indices = @transform_0, window_bounds = array<i64: 8, 256>}, {transform_indices = @transform_1, window_bounds = array<i64: 256, 128>}, {transform_indices = @transform_2, window_bounds = array<i64: 8, 128>}, {transform_indices = @transform_3, window_bounds = array<i64: 8, 128>}, {transform_indices = @transform_4, window_bounds = array<i64: 8, 128>}]} {
    %c0 = arith.constant 0 : index
    %c0_0 = arith.constant 0 : index
    %0 = vector.load %arg2[%c0, %c0_0] : memref<8x256xbf16, #tpu.memory_space<vmem>>, vector<8x256xbf16>
    %c0_1 = arith.constant 0 : index
    %c0_2 = arith.constant 0 : index
    %1 = vector.load %arg3[%c0_1, %c0_2] : memref<256x128xbf16, #tpu.memory_space<vmem>>, vector<256x128xbf16>
    %cst = arith.constant dense<0.000000e+00> : vector<8x128xf32>
    %2 = tpu.matmul %0, %1, %cst {dimension_numbers = #tpu.dot_dimension_numbers<[1], [0], [0], [1], [0, 0, 1, 1], [], []>} : vector<8x256xbf16>, vector<256x128xbf16>, vector<8x128xf32> -> vector<8x128xf32>
    %3 = arith.truncf %2 : vector<8x128xf32> to vector<8x128xbf16>
    %c0_3 = arith.constant 0 : index
    %c0_4 = arith.constant 0 : index
    %4 = vector.load %arg4[%c0_3, %c0_4] : memref<8x128xbf16, #tpu.memory_space<vmem>>, vector<8x128xbf16>
    tpu.vector_store %arg4[%c0_3, %c0_4], %3 {strides = array<i32>} : memref<8x128xbf16, #tpu.memory_space<vmem>>, vector<8x128xbf16>,
    %5 = vector.shape_cast %2 : vector<8x128xf32> to vector<1x8x128xf32>
    %cst_5 = arith.constant dense<0.000000e+00> : vector<8x128xf32>
    %6 = vector.multi_reduction <add>, %5, %cst_5 [0] : vector<1x8x128xf32> to vector<8x128xf32>
    %c0_6 = arith.constant 0 : index
    %c0_7 = arith.constant 0 : index
    %7 = vector.load %arg5[%c0_6, %c0_7] : memref<8x128xf32, #tpu.memory_space<vmem>>, vector<8x128xf32>
    tpu.vector_store %arg5[%c0_6, %c0_7], %6 {strides = array<i32>} : memref<8x128xf32, #tpu.memory_space<vmem>>, vector<8x128xf32>,
    %8 = arith.mulf %5, %5 : vector<1x8x128xf32>
    %cst_8 = arith.constant dense<0.000000e+00> : vector<8x128xf32>
    %9 = vector.multi_reduction <add>, %8, %cst_8 [0] : vector<1x8x128xf32> to vector<8x128xf32>
    %c0_9 = arith.constant 0 : index
    %c0_10 = arith.constant 0 : index
    %10 = vector.load %arg6[%c0_9, %c0_10] : memref<8x128xf32, #tpu.memory_space<vmem>>, vector<8x128xf32>
    tpu.vector_store %arg6[%c0_9, %c0_10], %9 {strides = array<i32>} : memref<8x128xf32, #tpu.memory_space<vmem>>, vector<8x128xf32>,
    return
  }
  func.func @transform_0(%arg0: i32, %arg1: i32) -> (i32, i32) {
    %c0_i32 = arith.constant 0 : i32
    %c0_i32_0 = arith.constant 0 : i32
    return %arg0, %c0_i32 : i32, i32
  }
  func.func @transform_1(%arg0: i32, %arg1: i32) -> (i32, i32) {
    %c0_i32 = arith.constant 0 : i32
    %c0_i32_0 = arith.constant 0 : i32
    return %c0_i32, %arg1 : i32, i32
  }
  func.func @transform_2(%arg0: i32, %arg1: i32) -> (i32, i32) {
    %c0_i32 = arith.constant 0 : i32
    return %arg0, %arg1 : i32, i32
  }
  func.func @transform_3(%arg0: i32, %arg1: i32) -> (i32, i32) {
    %c0_i32 = arith.constant 0 : i32
    return %arg0, %arg1 : i32, i32
  }
  func.func @transform_4(%arg0: i32, %arg1: i32) -> (i32, i32) {
    %c0_i32 = arith.constant 0 : i32
    return %arg0, %arg1 : i32, i32
  }
}

module attributes {stable_mosaic.version = 11 : i64} {
  func.func @bn_lrelu_kernel(%arg0: i32, %arg1: i32, %arg2: memref<8x128xbf16, #tpu.memory_space<vmem>>, %arg3: memref<1x128xf32, #tpu.memory_space<vmem>>, %arg4: memref<1x128xf32, #tpu.memory_space<vmem>>, %arg5: memref<8x128xbf16, #tpu.memory_space<vmem>>) attributes {dimension_semantics = [#tpu.dimension_semantics<parallel>, #tpu.dimension_semantics<parallel>], iteration_bounds = array<i64: 1, 1>, scalar_prefetch = 0 : i64, scratch_operands = 0 : i64, tpu.core_type = #tpu.core_type<tc>, window_params = [{transform_indices = @transform_0, window_bounds = array<i64: 8, 128>}, {transform_indices = @transform_1, window_bounds = array<i64: 1, 128>}, {transform_indices = @transform_2, window_bounds = array<i64: 1, 128>}, {transform_indices = @transform_3, window_bounds = array<i64: 8, 128>}]} {
    %c0 = arith.constant 0 : index
    %c0_0 = arith.constant 0 : index
    %0 = vector.load %arg2[%c0, %c0_0] : memref<8x128xbf16, #tpu.memory_space<vmem>>, vector<8x128xbf16>
    %1 = arith.extf %0 : vector<8x128xbf16> to vector<8x128xf32>
    %c0_1 = arith.constant 0 : index
    %c0_2 = arith.constant 0 : index
    %2 = vector.load %arg3[%c0_1, %c0_2] : memref<1x128xf32, #tpu.memory_space<vmem>>, vector<1x128xf32>
    %3 = vector.broadcast %2 : vector<1x128xf32> to vector<8x128xf32>
    %4 = arith.mulf %1, %3 : vector<8x128xf32>
    %c0_3 = arith.constant 0 : index
    %c0_4 = arith.constant 0 : index
    %5 = vector.load %arg4[%c0_3, %c0_4] : memref<1x128xf32, #tpu.memory_space<vmem>>, vector<1x128xf32>
    %6 = vector.broadcast %5 : vector<1x128xf32> to vector<8x128xf32>
    %7 = arith.addf %4, %6 : vector<8x128xf32>
    %cst = arith.constant 2.000000e-01 : f32
    %8 = vector.broadcast %cst : f32 to vector<8x128xf32>
    %9 = arith.mulf %8, %7 : vector<8x128xf32>
    %10 = arith.maximumf %7, %9 : vector<8x128xf32>
    %11 = arith.truncf %10 : vector<8x128xf32> to vector<8x128xbf16>
    %c0_5 = arith.constant 0 : index
    %c0_6 = arith.constant 0 : index
    %12 = vector.load %arg5[%c0_5, %c0_6] : memref<8x128xbf16, #tpu.memory_space<vmem>>, vector<8x128xbf16>
    tpu.vector_store %arg5[%c0_5, %c0_6], %11 {strides = array<i32>} : memref<8x128xbf16, #tpu.memory_space<vmem>>, vector<8x128xbf16>,
    return
  }
  func.func @transform_0(%arg0: i32, %arg1: i32) -> (i32, i32) {
    %c0_i32 = arith.constant 0 : i32
    return %arg0, %arg1 : i32, i32
  }
  func.func @transform_1(%arg0: i32, %arg1: i32) -> (i32, i32) {
    %c0_i32 = arith.constant 0 : i32
    %c0_i32_0 = arith.constant 0 : i32
    return %c0_i32, %arg1 : i32, i32
  }
  func.func @transform_2(%arg0: i32, %arg1: i32) -> (i32, i32) {
    %c0_i32 = arith.constant 0 : i32
    %c0_i32_0 = arith.constant 0 : i32
    return %c0_i32, %arg1 : i32, i32
  }
  func.func @transform_3(%arg0: i32, %arg1: i32) -> (i32, i32) {
    %c0_i32 = arith.constant 0 : i32
    return %arg0, %arg1 : i32, i32
  }
}

</mosaic_0001>

<bundles_post_ra>
// kernel: image_encoder_forward.7
= control target key start
LH: loop header
LB: loop body
LE: loop exit
PB: predicated region body
PF: predicated region fallthrough
CT: control target
= control target key end

     0   :  { %s1023_s1 = inlined_call_operand.vmem [shape: bf16[128,128], index: 1, kind: input, shape index: {}]   ;;  %s1024_s0 = inlined_call_operand.vmem [shape: bf16[256,128], index: 0, kind: input, shape index: {}]   ;;  %s1025_s2 = inlined_call_operand.vmem [shape: bf16[256,128], index: 2, kind: output, shape index: {}]  }
   0x1   :  { %v864_v0 = vld [vmem:[%s1023_s1] sm:$0xff]   ;;  %v865_v1 = vld [vmem:[%s1023_s1 + $0x8] sm:$0xff]   ;;  %v866_v2 = vld [vmem:[%s1023_s1 + $0x10] sm:$0xff]  }
   0x2   :  { %800 = vmatprep.subr.bf16.mxu0 %v864_v0  ;;  %848 = vmatprep.subr.bf16.mxu1 %v864_v0  ;;  %v867_v3 = vld [vmem:[%s1023_s1 + $0x18] sm:$0xff]   ;;  %v872_v4 = vld [vmem:[%s1024_s0] sm:$0xff]   ;;  %v869_v7 = vld [vmem:[%s1023_s1 + $0x28] sm:$0xff]  }
   0x3   :  { %801 = vmatpush3.bf16.msra.mxu0 %v864_v0  ;;  %856 = vmatpush3.bf16.msra.mxu1 %v864_v0  ;;  %v873_v5 = vld [vmem:[%s1024_s0 + $0x40] sm:$0xff]   ;;  %v870_v8 = vld [vmem:[%s1023_s1 + $0x30] sm:$0xff]   ;;  %v871_v9 = vld [vmem:[%s1023_s1 + $0x38] sm:$0xff]  }
   0x4   :  { %802 = vmatprep.subr.bf16.mxu0 %v865_v1  ;;  %849 = vmatprep.subr.bf16.mxu1 %v865_v1  ;;  %v868_v6 = vld [vmem:[%s1023_s1 + $0x20] sm:$0xff]   ;;  %v874_v10 = vld [vmem:[%s1024_s0 + $0x8] sm:$0xff]   ;;  %v876_v12 = vld [vmem:[%s1024_s0 + $0x10] sm:$0xff]  }
   0x5   :  { %816 = vmatprep.mubr.bf16.mxu0 %v872_v4  ;;  %832 = vmatprep.mubr.bf16.mxu1 %v873_v5  ;;  %v875_v11 = vld [vmem:[%s1024_s0 + $0x48] sm:$0xff]   ;;  %v877_v13 = vld [vmem:[%s1024_s0 + $0x50] sm:$0xff]   ;;  %v878_v14 = vld [vmem:[%s1024_s0 + $0x18] sm:$0xff]  }
   0x6   :  { %v879_v15 = vld [vmem:[%s1024_s0 + $0x58] sm:$0xff]   ;;  %v880_v16 = vld [vmem:[%s1024_s0 + $0x20] sm:$0xff]   ;;  %v882_v18 = vld [vmem:[%s1024_s0 + $0x28] sm:$0xff]  }
   0x7   :  { %803 = vmatpush3.bf16.msra.mxu0 %v865_v1  ;;  %857 = vmatpush3.bf16.msra.mxu1 %v865_v1  ;;  %v881_v17 = vld [vmem:[%s1024_s0 + $0x60] sm:$0xff]   ;;  %v883_v19 = vld [vmem:[%s1024_s0 + $0x68] sm:$0xff]   ;;  %v884_v20 = vld [vmem:[%s1024_s0 + $0x30] sm:$0xff]  }
   0x8   :  { %804 = vmatprep.subr.bf16.mxu0 %v866_v2  ;;  %850 = vmatprep.subr.bf16.mxu1 %v866_v2  ;;  %v885_v21 = vld [vmem:[%s1024_s0 + $0x70] sm:$0xff]   ;;  %v886_v22 = vld [vmem:[%s1024_s0 + $0x38] sm:$0xff]  }
   0x9   :  { %v887_v23 = vld [vmem:[%s1024_s0 + $0x78] sm:$0xff]  }
   0xb   :  { %805 = vmatpush3.bf16.msra.mxu0 %v866_v2  ;;  %858 = vmatpush3.bf16.msra.mxu1 %v866_v2 }
   0xc   :  { %806 = vmatprep.subr.bf16.mxu0 %v867_v3  ;;  %851 = vmatprep.subr.bf16.mxu1 %v867_v3 }
   0xf   :  { %807 = vmatpush3.bf16.msra.mxu0 %v867_v3  ;;  %859 = vmatpush3.bf16.msra.mxu1 %v867_v3 }
  0x10   :  { %808 = vmatprep.subr.bf16.mxu0 %v868_v6  ;;  %852 = vmatprep.subr.bf16.mxu1 %v868_v6 }
  0x13   :  { %809 = vmatpush3.bf16.msra.mxu0 %v868_v6  ;;  %860 = vmatpush3.bf16.msra.mxu1 %v868_v6 }
  0x14   :  { %810 = vmatprep.subr.bf16.mxu0 %v869_v7  ;;  %853 = vmatprep.subr.bf16.mxu1 %v869_v7 }
  0x17   :  { %811 = vmatpush3.bf16.msra.mxu0 %v869_v7  ;;  %861 = vmatpush3.bf16.msra.mxu1 %v869_v7 }
  0x18   :  { %812 = vmatprep.subr.bf16.mxu0 %v870_v8  ;;  %854 = vmatprep.subr.bf16.mxu1 %v870_v8 }
  0x1b   :  { %813 = vmatpush3.bf16.msra.mxu0 %v870_v8  ;;  %862 = vmatpush3.bf16.msra.mxu1 %v870_v8 }
  0x1c   :  { %814 = vmatprep.subr.bf16.mxu0 %v871_v9  ;;  %855 = vmatprep.subr.bf16.mxu1 %v871_v9 }
  0x1f   :  { %815 = vmatpush3.bf16.msra.mxu0 %v871_v9  ;;  %863 = vmatpush3.bf16.msra.mxu1 %v871_v9 }
  0x22   :  { %817 = vmatmul.mubr.bf16.vlgmr.msra.gmra.mrb[0].mxu0 %v874_v10  ;;  %833 = vmatmul.mubr.bf16.vlgmr.msra.gmra.mrb[0].mxu1 %v875_v11 }
  0x23   :  { %820 = vmatprep.mubr.bf16.mxu0 %v876_v12  ;;  %836 = vmatprep.mubr.bf16.mxu1 %v877_v13 }
  0x2a   :  { %821 = vmatmul.mubr.bf16.gmra.mrb[4].mxu0 %v878_v14  ;;  %837 = vmatmul.mubr.bf16.gmra.mrb[4].mxu1 %v879_v15 }
  0x2b   :  { %824 = vmatprep.mubr.bf16.mxu0 %v880_v16  ;;  %840 = vmatprep.mubr.bf16.mxu1 %v881_v17 }
  0x32   :  { %825 = vmatmul.mubr.bf16.gmra.mrb[8].mxu0 %v882_v18  ;;  %841 = vmatmul.mubr.bf16.gmra.mrb[8].mxu1 %v883_v19 }
  0x33   :  { %828 = vmatprep.mubr.bf16.mxu0 %v884_v20  ;;  %844 = vmatprep.mubr.bf16.mxu1 %v885_v21 }
  0x3a   :  { %829 = vmatmul.mubr.bf16.gmra.mrb[12].mxu0 %v886_v22  ;;  %845 = vmatmul.mubr.bf16.gmra.mrb[12].mxu1 %v887_v23 }
  0xf5   :  { %v818_v24 = vpop.f32.mrb[0].mxu0  ;;  %v834_v25 = vpop.f32.mrb[0].mxu1 }
  0xf6   :  { %v367_v26 = vmul.f32 0.2, %v818_v24  ;;  %v383_v27 = vmul.f32 0.2, %v834_v25  ;;  %v238_v28 = vpop.f32.mrb[1].mxu0  ;;  %v302_v29 = vpop.f32.mrb[1].mxu1 }
  0xf7   :  { %v365_v30 = vmul.f32 0.2, %v238_v28  ;;  %v381_v31 = vmul.f32 0.2, %v302_v29  ;;  %v819_v32 = vpop.f32.mrb[2].mxu0  ;;  %v835_v33 = vpop.f32.mrb[2].mxu1 }
  0xf8   :  { %v368_v34 = vmul.f32 0.2, %v819_v32  ;;  %v384_v35 = vmul.f32 0.2, %v835_v33  ;;  %v241_v36 = vpop.f32.mrb[3].mxu0  ;;  %v305_v37 = vpop.f32.mrb[3].mxu1  ;;  %v399_v40 = vmax.f32 %v818_v24, %v367_v26  ;;  %v415_v41 = vmax.f32 %v834_v25, %v383_v27 }
  0xf9   :  { %v366_v38 = vmul.f32 0.2, %v241_v36  ;;  %v382_v39 = vmul.f32 0.2, %v305_v37  ;;  %v397_v44 = vmax.f32 %v238_v28, %v365_v30  ;;  %v413_v45 = vmax.f32 %v302_v29, %v381_v31 }
  0xfa   :  { %v400_v42 = vmax.f32 %v819_v32, %v368_v34  ;;  %v416_v43 = vmax.f32 %v835_v33, %v384_v35 }
  0xfb   :  { %v398_v46 = vmax.f32 %v241_v36, %v366_v38  ;;  %v414_v47 = vmax.f32 %v305_v37, %v382_v39 }
  0xfc   :  { %v689_v48 = vpack.c.bf16 %v400_v42, %v399_v40  ;;  %v729_v49 = vpack.c.bf16 %v416_v43, %v415_v41 }
  0xfd   :  { %v684_v50 = vpack.c.bf16 %v398_v46, %v397_v44  ;;  %v724_v51 = vpack.c.bf16 %v414_v47, %v413_v45  ;;  %v822_v52 = vpop.f32.mrb[4].mxu0  ;;  %v838_v53 = vpop.f32.mrb[4].mxu1 }
  0xfe   :  { %761 = vst [vmem:[%s1025_s2 + $0x8] sm:$0xff] %v689_v48   ;;  %769 = vst [vmem:[%s1025_s2 + $0x48] sm:$0xff] %v729_v49   ;;  %v371_v54 = vmul.f32 0.2, %v822_v52  ;;  %v387_v55 = vmul.f32 0.2, %v838_v53 }
  0xff   :  { %v254_v56 = vpop.f32.mrb[5].mxu0  ;;  %v318_v57 = vpop.f32.mrb[5].mxu1  ;;  %685 = vst [vmem:[%s1025_s2] sm:$0xff] %v684_v50   ;;  %768 = vst [vmem:[%s1025_s2 + $0x40] sm:$0xff] %v724_v51  }
 0x100   :  { %v369_v58 = vmul.f32 0.2, %v254_v56  ;;  %v385_v59 = vmul.f32 0.2, %v318_v57  ;;  %v823_v60 = vpop.f32.mrb[6].mxu0  ;;  %v839_v61 = vpop.f32.mrb[6].mxu1  ;;  %v403_v4 = vmax.f32 %v822_v52, %v371_v54  ;;  %v419_v5 = vmax.f32 %v838_v53, %v387_v55 }
 0x101   :  { %v372_v62 = vmul.f32 0.2, %v823_v60  ;;  %v388_v63 = vmul.f32 0.2, %v839_v61  ;;  %v257_v0 = vpop.f32.mrb[7].mxu0  ;;  %v321_v1 = vpop.f32.mrb[7].mxu1 }
 0x102   :  { %v370_v2 = vmul.f32 0.2, %v257_v0  ;;  %v386_v3 = vmul.f32 0.2, %v321_v1  ;;  %v401_v8 = vmax.f32 %v254_v56, %v369_v58  ;;  %v417_v9 = vmax.f32 %v318_v57, %v385_v59 }
 0x103   :  { %v404_v6 = vmax.f32 %v823_v60, %v372_v62  ;;  %v420_v7 = vmax.f32 %v839_v61, %v388_v63 }
 0x104   :  { %v402_v10 = vmax.f32 %v257_v0, %v370_v2  ;;  %v418_v11 = vmax.f32 %v321_v1, %v386_v3 }
 0x105   :  { %v699_v12 = vpack.c.bf16 %v404_v6, %v403_v4  ;;  %v739_v13 = vpack.c.bf16 %v420_v7, %v419_v5  ;;  %v826_v16 = vpop.f32.mrb[8].mxu0  ;;  %v842_v17 = vpop.f32.mrb[8].mxu1 }
 0x106   :  { %v694_v14 = vpack.c.bf16 %v402_v10, %v401_v8  ;;  %v734_v15 = vpack.c.bf16 %v418_v11, %v417_v9  ;;  %v375_v18 = vmul.f32 0.2, %v826_v16  ;;  %v391_v19 = vmul.f32 0.2, %v842_v17  ;;  %v270_v20 = vpop.f32.mrb[9].mxu0  ;;  %v334_v21 = vpop.f32.mrb[9].mxu1 }
 0x107   :  { %763 = vst [vmem:[%s1025_s2 + $0x18] sm:$0xff] %v699_v12   ;;  %771 = vst [vmem:[%s1025_s2 + $0x58] sm:$0xff] %v739_v13   ;;  %v373_v22 = vmul.f32 0.2, %v270_v20  ;;  %v389_v23 = vmul.f32 0.2, %v334_v21 }
 0x108   :  { %762 = vst [vmem:[%s1025_s2 + $0x10] sm:$0xff] %v694_v14   ;;  %770 = vst [vmem:[%s1025_s2 + $0x50] sm:$0xff] %v734_v15   ;;  %v827_v24 = vpop.f32.mrb[10].mxu0  ;;  %v843_v25 = vpop.f32.mrb[10].mxu1  ;;  %v407_v32 = vmax.f32 %v826_v16, %v375_v18  ;;  %v423_v33 = vmax.f32 %v842_v17, %v391_v19 }
 0x109   :  { %v376_v26 = vmul.f32 0.2, %v827_v24  ;;  %v392_v27 = vmul.f32 0.2, %v843_v25  ;;  %v273_v28 = vpop.f32.mrb[11].mxu0  ;;  %v337_v29 = vpop.f32.mrb[11].mxu1  ;;  %v405_v36 = vmax.f32 %v270_v20, %v373_v22  ;;  %v421_v37 = vmax.f32 %v334_v21, %v389_v23 }
 0x10a   :  { %v374_v30 = vmul.f32 0.2, %v273_v28  ;;  %v390_v31 = vmul.f32 0.2, %v337_v29 }
 0x10b   :  { %v408_v34 = vmax.f32 %v827_v24, %v376_v26  ;;  %v424_v35 = vmax.f32 %v843_v25, %v392_v27 }
 0x10c   :  { %v406_v38 = vmax.f32 %v273_v28, %v374_v30  ;;  %v422_v39 = vmax.f32 %v337_v29, %v390_v31 }
 0x10d   :  { %v709_v40 = vpack.c.bf16 %v408_v34, %v407_v32  ;;  %v749_v41 = vpack.c.bf16 %v424_v35, %v423_v33  ;;  %v830_v44 = vpop.f32.mrb[12].mxu0  ;;  %v846_v45 = vpop.f32.mrb[12].mxu1 }
 0x10e   :  { %v704_v42 = vpack.c.bf16 %v406_v38, %v405_v36  ;;  %v744_v43 = vpack.c.bf16 %v422_v39, %v421_v37  ;;  %v379_v46 = vmul.f32 0.2, %v830_v44  ;;  %v395_v47 = vmul.f32 0.2, %v846_v45  ;;  %v286_v48 = vpop.f32.mrb[13].mxu0  ;;  %v350_v49 = vpop.f32.mrb[13].mxu1 }
 0x10f   :  { %765 = vst [vmem:[%s1025_s2 + $0x28] sm:$0xff] %v709_v40   ;;  %773 = vst [vmem:[%s1025_s2 + $0x68] sm:$0xff] %v749_v41   ;;  %v377_v50 = vmul.f32 0.2, %v286_v48  ;;  %v393_v51 = vmul.f32 0.2, %v350_v49 }
 0x110   :  { %764 = vst [vmem:[%s1025_s2 + $0x20] sm:$0xff] %v704_v42   ;;  %772 = vst [vmem:[%s1025_s2 + $0x60] sm:$0xff] %v744_v43   ;;  %v831_v52 = vpop.f32.mrb[14].mxu0  ;;  %v847_v53 = vpop.f32.mrb[14].mxu1  ;;  %v411_v60 = vmax.f32 %v830_v44, %v379_v46  ;;  %v427_v61 = vmax.f32 %v846_v45, %v395_v47 }
 0x111   :  { %v380_v54 = vmul.f32 0.2, %v831_v52  ;;  %v396_v55 = vmul.f32 0.2, %v847_v53  ;;  %v289_v56 = vpop.f32.mrb[15].mxu0  ;;  %v353_v57 = vpop.f32.mrb[15].mxu1  ;;  %v409_v0 = vmax.f32 %v286_v48, %v377_v50  ;;  %v425_v1 = vmax.f32 %v350_v49, %v393_v51 }
 0x112   :  { %v378_v58 = vmul.f32 0.2, %v289_v56  ;;  %v394_v59 = vmul.f32 0.2, %v353_v57 }
 0x113   :  { %v412_v62 = vmax.f32 %v831_v52, %v380_v54  ;;  %v428_v63 = vmax.f32 %v847_v53, %v396_v55 }
 0x114   :  { %v410_v2 = vmax.f32 %v289_v56, %v378_v58  ;;  %v426_v3 = vmax.f32 %v353_v57, %v394_v59 }
 0x115   :  { %v719_v4 = vpack.c.bf16 %v412_v62, %v411_v60  ;;  %v759_v5 = vpack.c.bf16 %v428_v63, %v427_v61 }
 0x116   :  { %v714_v6 = vpack.c.bf16 %v410_v2, %v409_v0  ;;  %v754_v7 = vpack.c.bf16 %v426_v3, %v425_v1 }
 0x117   :  { %767 = vst [vmem:[%s1025_s2 + $0x38] sm:$0xff] %v719_v4   ;;  %775 = vst [vmem:[%s1025_s2 + $0x78] sm:$0xff] %v759_v5  }
 0x118   :  { %766 = vst [vmem:[%s1025_s2 + $0x30] sm:$0xff] %v714_v6   ;;  %774 = vst [vmem:[%s1025_s2 + $0x70] sm:$0xff] %v754_v7  }

// kernel: image_encoder_forward.8
= control target key start
LH: loop header
LB: loop body
LE: loop exit
PB: predicated region body
PF: predicated region fallthrough
CT: control target
= control target key end

     0   :  { %s446_s1 = inlined_call_operand.vmem [shape: bf16[128,128], index: 1, kind: input, shape index: {}]   ;;  %s447_s0 = inlined_call_operand.vmem [shape: bf16[64,128], index: 0, kind: input, shape index: {}]   ;;  %s448_s2 = inlined_call_operand.vmem [shape: bf16[64,128], index: 2, kind: output, shape index: {0}]   ;;  %s449_s3 = inlined_call_operand.vmem [shape: f32[8,128], index: 3, kind: output, shape index: {1}]   ;;  %s450_s4 = inlined_call_operand.vmem [shape: f32[8,128], index: 4, kind: output, shape index: {2}]  }
   0x1   :  { %v355_v0 = vld [vmem:[%s446_s1] sm:$0xff]   ;;  %v356_v1 = vld [vmem:[%s446_s1 + $0x8] sm:$0xff]   ;;  %v357_v2 = vld [vmem:[%s446_s1 + $0x10] sm:$0xff]  }
   0x2   :  { %315 = vmatprep.subr.bf16.mxu0 %v355_v0  ;;  %339 = vmatprep.subr.bf16.mxu1 %v355_v0  ;;  %v358_v3 = vld [vmem:[%s446_s1 + $0x18] sm:$0xff]   ;;  %v363_v4 = vld [vmem:[%s447_s0] sm:$0xff]   ;;  %v365_v5 = vld [vmem:[%s447_s0 + $0x10] sm:$0xff]  }
   0x3   :  { %316 = vmatpush3.bf16.msra.mxu0 %v355_v0  ;;  %347 = vmatpush3.bf16.msra.mxu1 %v355_v0  ;;  %v359_v6 = vld [vmem:[%s446_s1 + $0x20] sm:$0xff]   ;;  %v360_v7 = vld [vmem:[%s446_s1 + $0x28] sm:$0xff]   ;;  %v361_v8 = vld [vmem:[%s446_s1 + $0x30] sm:$0xff]  }
   0x4   :  { %317 = vmatprep.subr.bf16.mxu0 %v356_v1  ;;  %340 = vmatprep.subr.bf16.mxu1 %v356_v1  ;;  %v362_v9 = vld [vmem:[%s446_s1 + $0x38] sm:$0xff]   ;;  %v364_v10 = vld [vmem:[%s447_s0 + $0x8] sm:$0xff]  }
   0x5   :  { %331 = vmatprep.mubr.bf16.mxu0 %v363_v4  ;;  %335 = vmatprep.mubr.bf16.mxu1 %v365_v5  ;;  %v366_v11 = vld [vmem:[%s447_s0 + $0x18] sm:$0xff]  }
   0x7   :  { %318 = vmatpush3.bf16.msra.mxu0 %v356_v1  ;;  %348 = vmatpush3.bf16.msra.mxu1 %v356_v1 }
   0x8   :  { %319 = vmatprep.subr.bf16.mxu0 %v357_v2  ;;  %341 = vmatprep.subr.bf16.mxu1 %v357_v2 }
   0xb   :  { %320 = vmatpush3.bf16.msra.mxu0 %v357_v2  ;;  %349 = vmatpush3.bf16.msra.mxu1 %v357_v2 }
   0xc   :  { %321 = vmatprep.subr.bf16.mxu0 %v358_v3  ;;  %342 = vmatprep.subr.bf16.mxu1 %v358_v3 }
   0xf   :  { %322 = vmatpush3.bf16.msra.mxu0 %v358_v3  ;;  %350 = vmatpush3.bf16.msra.mxu1 %v358_v3 }
  0x10   :  { %323 = vmatprep.subr.bf16.mxu0 %v359_v6  ;;  %343 = vmatprep.subr.bf16.mxu1 %v359_v6 }
  0x13   :  { %324 = vmatpush3.bf16.msra.mxu0 %v359_v6  ;;  %351 = vmatpush3.bf16.msra.mxu1 %v359_v6 }
  0x14   :  { %325 = vmatprep.subr.bf16.mxu0 %v360_v7  ;;  %344 = vmatprep.subr.bf16.mxu1 %v360_v7 }
  0x17   :  { %326 = vmatpush3.bf16.msra.mxu0 %v360_v7  ;;  %352 = vmatpush3.bf16.msra.mxu1 %v360_v7 }
  0x18   :  { %327 = vmatprep.subr.bf16.mxu0 %v361_v8  ;;  %345 = vmatprep.subr.bf16.mxu1 %v361_v8 }
  0x1b   :  { %328 = vmatpush3.bf16.msra.mxu0 %v361_v8  ;;  %353 = vmatpush3.bf16.msra.mxu1 %v361_v8 }
  0x1c   :  { %329 = vmatprep.subr.bf16.mxu0 %v362_v9  ;;  %346 = vmatprep.subr.bf16.mxu1 %v362_v9 }
  0x1f   :  { %330 = vmatpush3.bf16.msra.mxu0 %v362_v9  ;;  %354 = vmatpush3.bf16.msra.mxu1 %v362_v9 }
  0x22   :  { %332 = vmatmul.mubr.bf16.vlgmr.msra.gmra.mrb[0].mxu0 %v364_v10  ;;  %336 = vmatmul.mubr.bf16.vlgmr.msra.gmra.mrb[0].mxu1 %v366_v11 }
  0xf5   :  { %v333_v12 = vpop.f32.mrb[0].mxu0  ;;  %v337_v13 = vpop.f32.mrb[0].mxu1 }
  0xf6   :  { %v145_v14 = vpop.f32.mrb[1].mxu0  ;;  %v161_v15 = vpop.f32.mrb[1].mxu1  ;;  %v226_v27 = vmul.f32 %v333_v12, %v333_v12  ;;  %v230_v39 = vmul.f32 %v337_v13, %v337_v13 }
  0xf7   :  { %v334_v16 = vpop.f32.mrb[2].mxu0  ;;  %v338_v17 = vpop.f32.mrb[2].mxu1  ;;  %v224_v18 = vmul.f32 %v145_v14, %v145_v14  ;;  %v228_v33 = vmul.f32 %v161_v15, %v161_v15 }
  0xf8   :  { %v288_v19 = vpack.c.bf16 %v334_v16, %v333_v12  ;;  %v148_v20 = vpop.f32.mrb[3].mxu0  ;;  %v298_v21 = vpack.c.bf16 %v338_v17, %v337_v13  ;;  %v164_v22 = vpop.f32.mrb[3].mxu1  ;;  %v227_v30 = vmul.f32 %v334_v16, %v334_v16  ;;  %v231_v42 = vmul.f32 %v338_v17, %v338_v17 }
  0xf9   :  { %v283_v23 = vpack.c.bf16 %v148_v20, %v145_v14  ;;  %v216_v24 = vadd.f32 %v148_v20, %v145_v14  ;;  %v225_v25 = vmul.f32 %v148_v20, %v148_v20  ;;  %v293_v26 = vpack.c.bf16 %v164_v22, %v161_v15 }
  0xfa   :  { %300 = vst [vmem:[%s448_s2 + $0x8] sm:$0xff] %v288_v19   ;;  %302 = vst [vmem:[%s448_s2 + $0x18] sm:$0xff] %v298_v21   ;;  %v229_v38 = vmul.f32 %v164_v22, %v164_v22 }
  0xfb   :  { %284 = vst [vmem:[%s448_s2] sm:$0xff] %v283_v23   ;;  %v217_v28 = vadd.f32 %v333_v12, %v216_v24  ;;  %v232_v29 = vadd.f32 %v225_v25, %v224_v18  ;;  %301 = vst [vmem:[%s448_s2 + $0x10] sm:$0xff] %v293_v26  }
  0xfd   :  { %v233_v31 = vadd.f32 %v232_v29, %v226_v27  ;;  %v218_v32 = vadd.f32 %v334_v16, %v217_v28 }
  0xff   :  { %v219_v34 = vadd.f32 %v218_v32, %v161_v15  ;;  %v234_v35 = vadd.f32 %v233_v31, %v227_v30 }
 0x101   :  { %v235_v36 = vadd.f32 %v234_v35, %v228_v33  ;;  %v220_v37 = vadd.f32 %v219_v34, %v164_v22 }
 0x103   :  { %v221_v40 = vadd.f32 %v337_v13, %v220_v37  ;;  %v236_v41 = vadd.f32 %v235_v36, %v229_v38 }
 0x105   :  { %v222_v43 = vadd.f32 %v338_v17, %v221_v40  ;;  %v237_v44 = vadd.f32 %v236_v41, %v230_v39 }
 0x107   :  { %223 = vst [vmem:[%s449_s3] sm:$0xff] %v222_v43  ;;  %v238_v45 = vadd.f32 %v237_v44, %v231_v42 }
 0x109   :  { %239 = vst [vmem:[%s450_s4] sm:$0xff] %v238_v45 }

// kernel: image_encoder_forward.9
= control target key start
LH: loop header
LB: loop body
LE: loop exit
PB: predicated region body
PF: predicated region fallthrough
CT: control target
= control target key end

     0   :  { %s230_s0 = inlined_call_operand.vmem [shape: bf16[64,128], index: 0, kind: input, shape index: {}]   ;;  %s231_s1 = inlined_call_operand.vmem [shape: f32[1,128], index: 1, kind: input, shape index: {}]   ;;  %s232_s2 = inlined_call_operand.vmem [shape: f32[1,128], index: 2, kind: input, shape index: {}]   ;;  %s233_s3 = inlined_call_operand.vmem [shape: bf16[64,128], index: 3, kind: output, shape index: {}]  }
   0x1   :  { %v139_v0 = vld [vmem:[%s230_s0] sm:$0xff]   ;;  %v174_v4 = vld [vmem:[%s230_s0 + $0x8] sm:$0xff]   ;;  %v175_v5 = vld [vmem:[%s230_s0 + $0x10] sm:$0xff]  }
   0x2   :  { %v120_v1 = vld [vmem:[%s231_s1] ss:$0 sm:$0xff]  ;;  %v140_v2 = vunpack.c.l.bf16 %v139_v0  ;;  %v141_v3 = vunpack.c.h.bf16 %v139_v0  ;;  %v176_v6 = vld [vmem:[%s230_s0 + $0x18] sm:$0xff]   ;;  %v144_v8 = vunpack.c.l.bf16 %v174_v4  ;;  %v145_v9 = vunpack.c.h.bf16 %v174_v4 }
   0x3   :  { %v121_v7 = vld [vmem:[%s232_s2] ss:$0 sm:$0xff]  ;;  %v148_v10 = vunpack.c.l.bf16 %v175_v5  ;;  %v149_v11 = vunpack.c.h.bf16 %v175_v5  ;;  %v152_v14 = vunpack.c.l.bf16 %v176_v6  ;;  %v153_v15 = vunpack.c.h.bf16 %v176_v6 }
   0x4   :  { %v37_v12 = vmul.f32 %v140_v2, %v120_v1  ;;  %v38_v13 = vmul.f32 %v141_v3, %v120_v1  ;;  %v39_v16 = vmul.f32 %v144_v8, %v120_v1  ;;  %v40_v17 = vmul.f32 %v145_v9, %v120_v1 }
   0x5   :  { %v41_v18 = vmul.f32 %v148_v10, %v120_v1  ;;  %v42_v19 = vmul.f32 %v149_v11, %v120_v1  ;;  %v43_v22 = vmul.f32 %v152_v14, %v120_v1  ;;  %v44_v23 = vmul.f32 %v153_v15, %v120_v1 }
   0x6   :  { %v52_v20 = vadd.f32 %v121_v7, %v37_v12  ;;  %v53_v21 = vadd.f32 %v121_v7, %v38_v13  ;;  %v54_v24 = vadd.f32 %v121_v7, %v39_v16  ;;  %v55_v25 = vadd.f32 %v121_v7, %v40_v17 }
   0x7   :  { %v56_v26 = vadd.f32 %v121_v7, %v41_v18  ;;  %v57_v27 = vadd.f32 %v121_v7, %v42_v19  ;;  %v58_v30 = vadd.f32 %v121_v7, %v43_v22  ;;  %v59_v31 = vadd.f32 %v121_v7, %v44_v23 }
   0x8   :  { %v60_v28 = vmul.f32 0.2, %v52_v20  ;;  %v61_v29 = vmul.f32 0.2, %v53_v21  ;;  %v62_v32 = vmul.f32 0.2, %v54_v24 }
   0x9   :  { %v63_v33 = vmul.f32 0.2, %v55_v25  ;;  %v64_v34 = vmul.f32 0.2, %v56_v26  ;;  %v65_v37 = vmul.f32 0.2, %v57_v27 }
   0xa   :  { %v68_v35 = vmax.f32 %v52_v20, %v60_v28  ;;  %v69_v36 = vmax.f32 %v53_v21, %v61_v29  ;;  %v66_v38 = vmul.f32 0.2, %v58_v30  ;;  %v70_v39 = vmax.f32 %v54_v24, %v62_v32 }
   0xb   :  { %v71_v40 = vmax.f32 %v55_v25, %v63_v33  ;;  %v72_v41 = vmax.f32 %v56_v26, %v64_v34  ;;  %v67_v42 = vmul.f32 0.2, %v59_v31  ;;  %v73_v44 = vmax.f32 %v57_v27, %v65_v37 }
   0xc   :  { %v157_v43 = vpack.c.bf16 %v69_v36, %v68_v35  ;;  %v74_v45 = vmax.f32 %v58_v30, %v66_v38 }
   0xd   :  { %v162_v46 = vpack.c.bf16 %v71_v40, %v70_v39  ;;  %v75_v47 = vmax.f32 %v59_v31, %v67_v42  ;;  %v167_v48 = vpack.c.bf16 %v73_v44, %v72_v41 }
   0xe   :  { %158 = vst [vmem:[%s233_s3] sm:$0xff] %v157_v43  }
   0xf   :  { %177 = vst [vmem:[%s233_s3 + $0x8] sm:$0xff] %v162_v46   ;;  %v172_v49 = vpack.c.bf16 %v75_v47, %v74_v45  ;;  %178 = vst [vmem:[%s233_s3 + $0x10] sm:$0xff] %v167_v48  }
  0x11   :  { %179 = vst [vmem:[%s233_s3 + $0x18] sm:$0xff] %v172_v49  }

// kernel: image_encoder_forward.10
= control target key start
LH: loop header
LB: loop body
LE: loop exit
PB: predicated region body
PF: predicated region fallthrough
CT: control target
= control target key end

     0   :  { %v214_v0 = vmov 0.0   ;;  %vm215_vm0 = vmmov 0   ;;  %s277_s1 = inlined_call_operand.vmem [shape: bf16[128,128], index: 1, kind: input, shape index: {}]   ;;  %s278_s0 = inlined_call_operand.vmem [shape: bf16[16,128], index: 0, kind: input, shape index: {}]   ;;  %s279_s2 = inlined_call_operand.vmem [shape: bf16[16,128], index: 2, kind: output, shape index: {0}]   ;;  %s280_s3 = inlined_call_operand.vmem [shape: f32[8,128], index: 3, kind: output, shape index: {1}]   ;;  %s281_s4 = inlined_call_operand.vmem [shape: f32[8,128], index: 4, kind: output, shape index: {2}]  }
   0x1   :  { %183 = vmatprep.subr.bf16.mxu0 %v214_v0  ;;  %v205_v1 = vld [vmem:[%s277_s1] sm:$0xff]   ;;  %199 = vmatprep.mubr.msk.bf16.mxu0 %vm215_vm0, %v214_v0  ;;  %v206_v2 = vld [vmem:[%s277_s1 + $0x8] sm:$0xff]   ;;  %v207_v3 = vld [vmem:[%s277_s1 + $0x10] sm:$0xff]  }
   0x2   :  { %184 = vmatpush3.bf16.msra.mxu0 %v205_v1  ;;  %v208_v4 = vld [vmem:[%s277_s1 + $0x18] sm:$0xff]   ;;  %v209_v5 = vld [vmem:[%s277_s1 + $0x20] sm:$0xff]   ;;  %v210_v6 = vld [vmem:[%s277_s1 + $0x28] sm:$0xff]  }
   0x3   :  { %185 = vmatprep.subr.bf16.mxu0 %v214_v0  ;;  %v211_v7 = vld [vmem:[%s277_s1 + $0x30] sm:$0xff]   ;;  %v212_v8 = vld [vmem:[%s277_s1 + $0x38] sm:$0xff]   ;;  %v213_v9 = vld [vmem:[%s278_s0] sm:$0xff]  }
   0x6   :  { %186 = vmatpush3.bf16.msra.mxu0 %v206_v2 }
   0x7   :  { %187 = vmatprep.subr.bf16.mxu0 %v214_v0 }
   0xa   :  { %188 = vmatpush3.bf16.msra.mxu0 %v207_v3 }
   0xb   :  { %189 = vmatprep.subr.bf16.mxu0 %v214_v0 }
   0xe   :  { %190 = vmatpush3.bf16.msra.mxu0 %v208_v4 }
   0xf   :  { %191 = vmatprep.subr.bf16.mxu0 %v214_v0 }
  0x12   :  { %192 = vmatpush3.bf16.msra.mxu0 %v209_v5 }
  0x13   :  { %193 = vmatprep.subr.bf16.mxu0 %v214_v0 }
  0x16   :  { %194 = vmatpush3.bf16.msra.mxu0 %v210_v6 }
  0x17   :  { %195 = vmatprep.subr.bf16.mxu0 %v214_v0 }
  0x1a   :  { %196 = vmatpush3.bf16.msra.mxu0 %v211_v7 }
  0x1b   :  { %197 = vmatprep.subr.bf16.mxu0 %v214_v0 }
  0x1e   :  { %198 = vmatpush3.bf16.msra.mxu0 %v212_v8 }
  0x21   :  { %200 = vmatmul.mubr.bf16.vlgmr.msra.gmra.mrb[0].mxu0 %v213_v9 }
  0xf4   :  { %v121_v10 = vpop.f32.mrb[0].mxu0 }
  0xf5   :  { %v201_v11 = vpop.f32.mrb[1].mxu0  ;;  %v140_v13 = vmul.f32 %v121_v10, %v121_v10 }
  0xf6   :  { %v124_v12 = vpop.f32.mrb[2].mxu0 }
  0xf7   :  { %v172_v14 = vpack.c.bf16 %v124_v12, %v121_v10  ;;  %v138_v15 = vadd.f32 %v124_v12, %v121_v10  ;;  %v141_v16 = vmul.f32 %v124_v12, %v124_v12  ;;  %v202_v17 = vpop.f32.mrb[3].mxu0 }
  0xf9   :  { %173 = vst [vmem:[%s279_s2] sm:$0xff] %v172_v14   ;;  %139 = vst [vmem:[%s280_s3] sm:$0xff] %v138_v15  ;;  %v142_v18 = vadd.f32 %v141_v16, %v140_v13 }
  0xfb   :  { %143 = vst [vmem:[%s281_s4] sm:$0xff] %v142_v18 }

// kernel: image_encoder_forward.11
= control target key start
LH: loop header
LB: loop body
LE: loop exit
PB: predicated region body
PF: predicated region fallthrough
CT: control target
= control target key end

     0   :  { %s101_s0 = inlined_call_operand.vmem [shape: bf16[16,128], index: 0, kind: input, shape index: {}]   ;;  %s102_s1 = inlined_call_operand.vmem [shape: f32[1,128], index: 1, kind: input, shape index: {}]   ;;  %s103_s2 = inlined_call_operand.vmem [shape: f32[1,128], index: 2, kind: input, shape index: {}]   ;;  %s104_s3 = inlined_call_operand.vmem [shape: bf16[16,128], index: 3, kind: output, shape index: {}]  }
   0x1   :  { %v61_v0 = vld [vmem:[%s101_s0] sm:$0xff]  }
   0x2   :  { %v54_v1 = vld [vmem:[%s102_s1] ss:$0 sm:$0xff]  ;;  %v62_v2 = vunpack.c.l.bf16 %v61_v0  ;;  %v63_v3 = vunpack.c.h.bf16 %v61_v0 }
   0x3   :  { %v55_v4 = vld [vmem:[%s103_s2] ss:$0 sm:$0xff] }
   0x4   :  { %v25_v5 = vmul.f32 %v62_v2, %v54_v1  ;;  %v26_v6 = vmul.f32 %v63_v3, %v54_v1 }
   0x6   :  { %v34_v7 = vadd.f32 %v55_v4, %v25_v5  ;;  %v35_v8 = vadd.f32 %v55_v4, %v26_v6 }
   0x8   :  { %v36_v9 = vmul.f32 0.2, %v34_v7  ;;  %v37_v10 = vmul.f32 0.2, %v35_v8 }
   0xa   :  { %v38_v11 = vmax.f32 %v34_v7, %v36_v9  ;;  %v39_v12 = vmax.f32 %v35_v8, %v37_v10 }
   0xc   :  { %v67_v13 = vpack.c.bf16 %v39_v12, %v38_v11 }
   0xe   :  { %68 = vst [vmem:[%s104_s3] sm:$0xff] %v67_v13  }

// kernel: image_encoder_forward.12
= control target key start
LH: loop header
LB: loop body
LE: loop exit
PB: predicated region body
PF: predicated region fallthrough
CT: control target
= control target key end

     0   :  { %s353_s1 = inlined_call_operand.vmem [shape: bf16[256,128], index: 1, kind: input, shape index: {}]   ;;  %s354_s0 = inlined_call_operand.vmem [shape: bf16[8,256], index: 0, kind: input, shape index: {}]   ;;  %s355_s3 = inlined_call_operand.vmem [shape: f32[8,128], index: 3, kind: output, shape index: {1}]   ;;  %s356_s2 = inlined_call_operand.vmem [shape: bf16[8,128], index: 2, kind: output, shape index: {0}]   ;;  %s357_s4 = inlined_call_operand.vmem [shape: f32[8,128], index: 4, kind: output, shape index: {2}]  }
   0x1   :  { %v250_v0 = vld [vmem:[%s353_s1 + $0x40] sm:$0xff]   ;;  %v252_v2 = vld [vmem:[%s353_s1 + $0x48] sm:$0xff]   ;;  %v254_v4 = vld [vmem:[%s353_s1 + $0x50] sm:$0xff]  }
   0x2   :  { %v251_v1 = vld [vmem:[%s353_s1] sm:$0xff]   ;;  %228 = vmatprep.subr.bf16.mxu0 %v250_v0  ;;  %v253_v3 = vld [vmem:[%s353_s1 + $0x8] sm:$0xff]   ;;  %v255_v5 = vld [vmem:[%s353_s1 + $0x10] sm:$0xff]  }
   0x3   :  { %229 = vmatpush3.bf16.msra.mxu0 %v251_v1  ;;  %v256_v6 = vld [vmem:[%s353_s1 + $0x58] sm:$0xff]   ;;  %v258_v8 = vld [vmem:[%s353_s1 + $0x60] sm:$0xff]   ;;  %v260_v10 = vld [vmem:[%s353_s1 + $0x68] sm:$0xff]  }
   0x4   :  { %230 = vmatprep.subr.bf16.mxu0 %v252_v2  ;;  %v257_v7 = vld [vmem:[%s353_s1 + $0x18] sm:$0xff]   ;;  %v259_v9 = vld [vmem:[%s353_s1 + $0x20] sm:$0xff]   ;;  %v261_v13 = vld [vmem:[%s353_s1 + $0x28] sm:$0xff]  }
   0x5   :  { %v15_v11 = vld [vmem:[%s354_s0] sm:$0xff]  ;;  %v262_v14 = vld [vmem:[%s353_s1 + $0x70] sm:$0xff]   ;;  %v264_v16 = vld [vmem:[%s353_s1 + $0x78] sm:$0xff]  }
   0x6   :  { %v211_v12 = vcombine.high %v15_v11, %v15_v11  ;;  %v263_v15 = vld [vmem:[%s353_s1 + $0x30] sm:$0xff]   ;;  %v265_v17 = vld [vmem:[%s353_s1 + $0x38] sm:$0xff]   ;;  %v210_v18 = vcombine.low %v15_v11, %v15_v11 }
   0x7   :  { %231 = vmatpush3.bf16.msra.mxu0 %v253_v3 }
   0x8   :  { %232 = vmatprep.subr.bf16.mxu0 %v254_v4  ;;  %183 = vmatprep.mubr.bf16.mxu0 %v211_v12 }
   0xb   :  { %233 = vmatpush3.bf16.msra.mxu0 %v255_v5 }
   0xc   :  { %234 = vmatprep.subr.bf16.mxu0 %v256_v6 }
   0xf   :  { %235 = vmatpush3.bf16.msra.mxu0 %v257_v7 }
  0x10   :  { %236 = vmatprep.subr.bf16.mxu0 %v258_v8 }
  0x13   :  { %237 = vmatpush3.bf16.msra.mxu0 %v259_v9 }
  0x14   :  { %238 = vmatprep.subr.bf16.mxu0 %v260_v10 }
  0x17   :  { %239 = vmatpush3.bf16.msra.mxu0 %v261_v13 }
  0x18   :  { %240 = vmatprep.subr.bf16.mxu0 %v262_v14 }
  0x1b   :  { %241 = vmatpush3.bf16.msra.mxu0 %v263_v15 }
  0x1c   :  { %242 = vmatprep.subr.bf16.mxu0 %v264_v16 }
  0x1f   :  { %243 = vmatpush3.bf16.msra.mxu0 %v265_v17 }
  0x22   :  { %184 = vmatmul.mubr.bf16.vlgmr.msra.gmra.mrb[0].mxu0 %v210_v18 }
  0xf5   :  { %v244_v19 = vpop.f32.mrb[0].mxu0 }
  0xf6   :  { %v245_v20 = vpop.f32.mrb[1].mxu0 }
  0xf7   :  { %v246_v21 = vadd.f32 %v245_v20, %v244_v19  ;;  %v247_v22 = vpop.f32.mrb[2].mxu0 }
  0xf8   :  { %v248_v23 = vpop.f32.mrb[3].mxu0 }
  0xf9   :  { %v191_v24 = vpack.c.bf16 %v246_v21, %v246_v21  ;;  %194 = vst [vmem:[%s355_s3] sm:$0xff] %v246_v21  ;;  %v195_v25 = vmul.f32 %v246_v21, %v246_v21 }
  0xfb   :  { %192 = vst [vmem:[%s356_s2] sm:$0xf] %v191_v24  ;;  %197 = vst [vmem:[%s357_s4] sm:$0xff] %v195_v25 }

// kernel: image_encoder_forward.13
= control target key start
LH: loop header
LB: loop body
LE: loop exit
PB: predicated region body
PF: predicated region fallthrough
CT: control target
= control target key end

     0   :  { %s74_s0 = inlined_call_operand.vmem [shape: bf16[8,128], index: 0, kind: input, shape index: {}]   ;;  %s75_s1 = inlined_call_operand.vmem [shape: f32[1,128], index: 1, kind: input, shape index: {}]   ;;  %s76_s2 = inlined_call_operand.vmem [shape: f32[1,128], index: 2, kind: input, shape index: {}]   ;;  %s77_s3 = inlined_call_operand.vmem [shape: bf16[8,128], index: 3, kind: output, shape index: {}]  }
   0x1   :  { %v14_v0 = vld [vmem:[%s74_s0] sm:$0xf] }
   0x2   :  { %v40_v1 = vld [vmem:[%s75_s1] ss:$0 sm:$0xff]  ;;  %v15_v2 = vunpack.c.l.bf16 %v14_v0 }
   0x3   :  { %v41_v3 = vld [vmem:[%s76_s2] ss:$0 sm:$0xff] }
   0x4   :  { %v23_v4 = vmul.f32 %v40_v1, %v15_v2 }
   0x6   :  { %v31_v5 = vadd.f32 %v41_v3, %v23_v4 }
   0x8   :  { %v32_v6 = vmul.f32 0.2, %v31_v5 }
   0xa   :  { %v33_v7 = vmax.f32 %v31_v5, %v32_v6 }
   0xc   :  { %v34_v8 = vpack.c.bf16 %v33_v7, %v33_v7 }
   0xe   :  { %35 = vst [vmem:[%s77_s3] sm:$0xf] %v34_v8 }

</bundles_post_ra>
